<compile_context>
chip_gen: v7x
topology: tpu7x:2x2x1
jax: 0.10.0
libtpu: 0.0.40
codegen_flags: <defaults>
</compile_context>

<pallas_src>
import functools

import jax
import jax.numpy as jnp
from jax.experimental import pallas as pl
from jax.experimental.pallas import tpu as pltpu


def _round_up(x, m):
    return ((x + m - 1) // m) * m


def _vmem_capacity_bytes():
    """Per-core VMEM capacity; conservative 64 MiB (v7x) if unknown."""
    try:
        info = pltpu.get_tpu_info()
        for name in ("vmem_capacity_bytes", "vmem_bytes", "vmem_size_bytes"):
            v = getattr(info, name, None)
            if v:
                return int(v)
    except Exception:
        pass
    return 64 << 20


@functools.lru_cache(maxsize=1)
def _single_buffering_supported():
    """One-time capability probe for pl.Buffered(1) on grid-invariant inputs."""
    def k(c_ref, x_ref, o_ref):
        o_ref[...] = x_ref[...] + c_ref[...]

    try:
        c = jnp.ones((1, 128), jnp.float32)
        x = jnp.ones((16, 128), jnp.float32)
        out = pl.pallas_call(
            k,
            out_shape=jax.ShapeDtypeStruct((16, 128), jnp.float32),
            grid_spec=pltpu.PrefetchScalarGridSpec(
                num_scalar_prefetch=0,
                grid=(2,),
                in_specs=[
                    pl.BlockSpec((1, 128), lambda i: (0, 0),
                                 pipeline_mode=pl.Buffered(1)),
                    pl.BlockSpec((8, 128), lambda i: (i, 0)),
                ],
                out_specs=pl.BlockSpec((8, 128), lambda i: (i, 0)),
            ),
        )(c, x)
        jax.block_until_ready(out)
        return bool(jnp.all(out == 2.0))
    except Exception:
        return False


# ----------------------------------------------------------------------------
# Kernels
# ----------------------------------------------------------------------------
def _layernorm_bf16(x_f32, gamma, beta, *, eps, d_model, d_model_pad):
    """f32 LayerNorm over the (possibly zero-padded) model dim -> bf16."""
    if d_model_pad != d_model:
        # Padded columns of x are zero; mask them out of the variance and
        # normalize by the REAL d_model.
        mask = jax.lax.broadcasted_iota(jnp.int32, x_f32.shape, 1) < d_model
        inv_n = 1.0 / d_model
        mean = jnp.sum(x_f32, axis=-1, keepdims=True) * inv_n
        cen = jnp.where(mask, x_f32 - mean, 0.0)
        var = jnp.sum(cen * cen, axis=-1, keepdims=True) * inv_n
    else:
        mean = jnp.mean(x_f32, axis=-1, keepdims=True)
        cen = x_f32 - mean
        var = jnp.mean(cen * cen, axis=-1, keepdims=True)
    xn = cen * jax.lax.rsqrt(var + eps)
    return (xn * gamma + beta).astype(jnp.bfloat16)


def _ffn_kernel_resident(x_ref, gamma_ref, beta_ref, w1_ref, b1_ref, w2_ref,
                         b2_ref, o_ref, *, eps, d_model, d_model_pad):
    """nk == 1 path: whole W1/W2 resident, no accumulator scratch."""
    xn = _layernorm_bf16(x_ref[...].astype(jnp.float32),
                         gamma_ref[...], beta_ref[...],
                         eps=eps, d_model=d_model, d_model_pad=d_model_pad)
    h = jnp.dot(xn, w1_ref[...], preferred_element_type=jnp.float32)
    # Fused bias + ReLU + bf16 cast (keeps f32 VPU chain minimal on v5e).
    h = jnp.maximum(h + b1_ref[...], 0.0).astype(jnp.bfloat16)
    # TODO(synk): training-mode dropout (pltpu.prng_random_bits masking) not
    # implemented; eval mode => identity.
    out = jnp.dot(h, w2_ref[...], preferred_element_type=jnp.float32)
    o_ref[...] = (out + b2_ref[...]).astype(o_ref.dtype)


def _ffn_kernel_chunked(x_ref, gamma_ref, beta_ref, w1_ref, b1_ref, w2_ref,
                        b2_ref, o_ref, xn_scr, acc_scr, *, eps, d_model,
                        d_model_pad):
    """d_inner chunked path (only used when the resident path cannot fit)."""
    k = pl.program_id(1)
    nk = pl.num_programs(1)

    @pl.when(k == 0)
    def _():
        xn_scr[...] = _layernorm_bf16(x_ref[...].astype(jnp.float32),
                                      gamma_ref[...], beta_ref[...],
                                      eps=eps, d_model=d_model,
                                      d_model_pad=d_model_pad)
        acc_scr[...] = jnp.zeros_like(acc_scr)

    h = jnp.dot(xn_scr[...], w1_ref[...], preferred_element_type=jnp.float32)
    h = jnp.maximum(h + b1_ref[...], 0.0).astype(jnp.bfloat16)
    acc_scr[...] += jnp.dot(h, w2_ref[...], preferred_element_type=jnp.float32)

    @pl.when(k == nk - 1)
    def _():
        o_ref[...] = (acc_scr[...] + b2_ref[...]).astype(o_ref.dtype)


# ----------------------------------------------------------------------------
# Tiling / residency selection (explicit VMEM byte model)
# ----------------------------------------------------------------------------
def _choose_config(M, d_model_pad, d_inner, x_itemsize, out_itemsize,
                   vmem_budget, wt_buf):
    tm_cap = _round_up(M, 8)
    top = 1024 if M >= 4096 else 512
    cands = []
    for t in (1024, 512, 256, 128, 64, 32, 16, 8):
        if t > top:
            continue
        te = min(t, tm_cap)
        if te not in cands:
            cands.append(te)

    # ---- resident (nk == 1) candidate: whole bf16 W1/W2 kept in VMEM ----
    d_inner_res = _round_up(d_inner, 128)

    def resident_bytes(tm):
        return (2 * d_model_pad * d_inner_res * 2 * wt_buf      # W1 + W2 (bf16)
                + 2 * tm * d_model_pad * x_itemsize             # x tile (2-buf)
                + 2 * tm * d_model_pad * out_itemsize           # out tile (2-buf)
                + tm * d_model_pad * (4 + 2 + 4)                # LN f32 / xn bf16 / out f32
                + tm * d_inner_res * (4 + 2)                    # h f32 + bf16
                + 4 * (d_inner_res + 3 * d_model_pad) * wt_buf)  # biases / LN params

    for tm in cands:
        if resident_bytes(tm) <= vmem_budget:
            if tm >= min(128, tm_cap):
                return {"mode": "resident", "tm": tm, "tk": d_inner_res,
                        "d_inner_pad": d_inner_res,
                        "vmem_bytes": resident_bytes(tm)}
            break  # resident only fits with a tiny token tile -> chunk instead

    # ---- chunked fallback: stream d_inner in tk chunks (double-buffered) ----
    d_inner_128 = _round_up(d_inner, 128)

    def chunked_bytes(tm, tk):
        return (2 * 2 * d_model_pad * tk * 2                    # W1/W2 chunks (2-buf, bf16)
                + 2 * tm * d_model_pad * x_itemsize
                + 2 * tm * d_model_pad * out_itemsize
                + tm * d_model_pad * (2 + 4)                    # xn bf16 + acc f32 scratch
                + tm * d_model_pad * 4                          # LN f32 temp
                + tm * tk * (4 + 2)                             # h f32 + bf16
                + 2 * 4 * (tk + 3 * d_model_pad))

    for tm in cands:
        # Keep the (tm, tk) intermediate (f32 + bf16 copy) around <= 6 MiB.
        tk_hi = min(2048, d_inner_128,
                    max(128, ((6 << 20) // (tm * 6)) // 128 * 128))
        tk = tk_hi
        while tk >= 128:
            if chunked_bytes(tm, tk) <= vmem_budget:
                return {"mode": "chunked", "tm": tm, "tk": tk,
                        "d_inner_pad": _round_up(d_inner, tk),
                        "vmem_bytes": chunked_bytes(tm, tk)}
            tk -= 128

    tm = min(8, tm_cap)
    return {"mode": "chunked", "tm": tm, "tk": 128,
            "d_inner_pad": _round_up(d_inner, 128),
            "vmem_bytes": chunked_bytes(tm, 128)}


# ----------------------------------------------------------------------------
# Public wrapper
# ----------------------------------------------------------------------------
def feed_forward(x, gamma, beta, w1, b1, w2, b2, *, eps=1e-5):
    """x: (B, T, d_model) -> (B, T, d_model). Eval-mode FeedForward."""
    B, T, d_model = x.shape
    d_inner = w1.shape[1]
    M = B * T

    d_model_pad = _round_up(d_model, 128)      # lane-dense model dim
    x_itemsize = jnp.dtype(x.dtype).itemsize   # bf16 inputs stay bf16
    out_itemsize = x_itemsize

    vmem_cap = _vmem_capacity_bytes()
    vmem_budget = int(vmem_cap * 0.8)          # headroom for Mosaic scratch

    buffered_ok = _single_buffering_supported()
    wt_buf = 1 if buffered_ok else 2
    const_kw = {"pipeline_mode": pl.Buffered(1)} if buffered_ok else {}

    cfg = _choose_config(M, d_model_pad, d_inner, x_itemsize, out_itemsize,
                         vmem_budget, wt_buf)
    tm, tk, d_inner_pad = cfg["tm"], cfg["tk"], cfg["d_inner_pad"]
    M_pad = _round_up(M, tm)
    n_i = M_pad // tm

    # ---- prepare operands (bf16 weights, zero-padded to lane-dense dims) ----
    x2 = x.reshape(M, d_model)
    if M_pad != M or d_model_pad != d_model:
        x2 = jnp.pad(x2, ((0, M_pad - M), (0, d_model_pad - d_model)))

    w1b = jnp.pad(w1.astype(jnp.bfloat16),
                  ((0, d_model_pad - d_model), (0, d_inner_pad - d_inner)))
    w2b = jnp.pad(w2.astype(jnp.bfloat16),
                  ((0, d_inner_pad - d_inner), (0, d_model_pad - d_model)))
    gamma2 = jnp.pad(gamma.astype(jnp.float32),
                     (0, d_model_pad - d_model)).reshape(1, d_model_pad)
    beta2 = jnp.pad(beta.astype(jnp.float32),
                    (0, d_model_pad - d_model)).reshape(1, d_model_pad)
    b1_2 = jnp.pad(b1.astype(jnp.float32),
                   (0, d_inner_pad - d_inner)).reshape(1, d_inner_pad)
    b2_2 = jnp.pad(b2.astype(jnp.float32),
                   (0, d_model_pad - d_model)).reshape(1, d_model_pad)

    # ---- honest cost estimate (weights counted per actual HBM traffic) ----
    weight_bytes = (w1b.size + w2b.size) * 2
    weight_passes = 1 if cfg["mode"] == "resident" else n_i
    cost = pl.CostEstimate(
        flops=4 * M_pad * d_model_pad * d_inner_pad,
        transcendentals=0,
        bytes_accessed=int(x2.size * x_itemsize
                           + weight_bytes * weight_passes
                           + M_pad * d_model_pad * out_itemsize),
    )

    vmem_limit = int(max(32 << 20,
                         min(int(vmem_cap * 0.9),
                             int(cfg["vmem_bytes"] * 1.4) + (8 << 20))))

    if cfg["mode"] == "resident":
        kernel = functools.partial(_ffn_kernel_resident, eps=eps,
                                   d_model=d_model, d_model_pad=d_model_pad)
        grid = (n_i,)
        in_specs = [
            pl.BlockSpec((tm, d_model_pad), lambda i: (i, 0)),                      # x
            pl.BlockSpec((1, d_model_pad), lambda i: (0, 0), **const_kw),           # gamma
            pl.BlockSpec((1, d_model_pad), lambda i: (0, 0), **const_kw),           # beta
            pl.BlockSpec((d_model_pad, d_inner_pad), lambda i: (0, 0), **const_kw),  # W1
            pl.BlockSpec((1, d_inner_pad), lambda i: (0, 0), **const_kw),           # b1
            pl.BlockSpec((d_inner_pad, d_model_pad), lambda i: (0, 0), **const_kw),  # W2
            pl.BlockSpec((1, d_model_pad), lambda i: (0, 0), **const_kw),           # b2
        ]
        out_specs = pl.BlockSpec((tm, d_model_pad), lambda i: (i, 0))
        scratch = ()
        dims = ("parallel",)
    else:
        nk = d_inner_pad // tk
        kernel = functools.partial(_ffn_kernel_chunked, eps=eps,
                                   d_model=d_model, d_model_pad=d_model_pad)
        grid = (n_i, nk)
        in_specs = [
            pl.BlockSpec((tm, d_model_pad), lambda i, k: (i, 0)),                   # x
            pl.BlockSpec((1, d_model_pad), lambda i, k: (0, 0), **const_kw),        # gamma
            pl.BlockSpec((1, d_model_pad), lambda i, k: (0, 0), **const_kw),        # beta
            pl.BlockSpec((d_model_pad, tk), lambda i, k: (0, k)),                   # W1 chunk
            pl.BlockSpec((1, tk), lambda i, k: (0, k)),                             # b1 chunk
            pl.BlockSpec((tk, d_model_pad), lambda i, k: (k, 0)),                   # W2 chunk
            pl.BlockSpec((1, d_model_pad), lambda i, k: (0, 0), **const_kw),        # b2
        ]
        out_specs = pl.BlockSpec((tm, d_model_pad), lambda i, k: (i, 0))
        scratch = (
            pltpu.VMEM((tm, d_model_pad), jnp.bfloat16),   # post-LN activations
            pltpu.VMEM((tm, d_model_pad), jnp.float32),    # f32 accumulator
        )
        dims = ("parallel", "arbitrary")

    out2 = pl.pallas_call(
        kernel,
        out_shape=jax.ShapeDtypeStruct((M_pad, d_model_pad), x.dtype),
        grid_spec=pltpu.PrefetchScalarGridSpec(
            num_scalar_prefetch=0,
            grid=grid,
            in_specs=in_specs,
            out_specs=out_specs,
            scratch_shapes=scratch,
        ),
        compiler_params=pltpu.CompilerParams(
            dimension_semantics=dims,
            vmem_limit_bytes=vmem_limit,
        ),
        cost_estimate=cost,
    )(x2, gamma2, beta2, w1b, b1_2, w2b, b2_2)

    out2 = out2[:M, :d_model]
    return out2.reshape(B, T, d_model)


# ----------------------------------------------------------------------------
# Reference (mirrors kernel numerics: f32 LayerNorm, bf16 MXU inputs, f32 acc)
# ----------------------------------------------------------------------------
def _reference(x, gamma, beta, w1, b1, w2, b2, eps=1e-5):
    xf = x.astype(jnp.float32)
    mean = jnp.mean(xf, axis=-1, keepdims=True)
    var = jnp.mean(jnp.square(xf - mean), axis=-1, keepdims=True)
    xn = (xf - mean) * jax.lax.rsqrt(var + eps) * gamma + beta
    h = jnp.dot(xn.astype(jnp.bfloat16), w1.astype(jnp.bfloat16),
                preferred_element_type=jnp.float32) + b1
    h = jnp.maximum(h, 0.0)
    out = jnp.dot(h.astype(jnp.bfloat16), w2.astype(jnp.bfloat16),
                  preferred_element_type=jnp.float32) + b2
    return out.astype(x.dtype)


if __name__ == "__main__":
    # Small shapes consistent with the module: batch=2, seq=8, d_model=32, d_inner=64.
    B, T, d_model, d_inner = 2, 8, 32, 64
    key = jax.random.PRNGKey(0)
    kx, kg, kb, kw1, kb1, kw2, kb2 = jax.random.split(key, 7)

    x = jax.random.normal(kx, (B, T, d_model), dtype=jnp.float32)

    # Deterministic synthetic parameters (shapes match nn.LayerNorm / nn.Linear).
    gamma = 1.0 + 0.1 * jax.random.normal(kg, (d_model,), dtype=jnp.float32)
    beta = 0.1 * jax.random.normal(kb, (d_model,), dtype=jnp.float32)
    w1 = jax.random.normal(kw1, (d_model, d_inner), dtype=jnp.float32) / jnp.sqrt(d_model)
    b1 = 0.01 * jax.random.normal(kb1, (d_inner,), dtype=jnp.float32)
    w2 = jax.random.normal(kw2, (d_inner, d_model), dtype=jnp.float32) / jnp.sqrt(d_inner)
    b2 = 0.01 * jax.random.normal(kb2, (d_model,), dtype=jnp.float32)

    out = feed_forward(x, gamma, beta, w1, b1, w2, b2)
    out = jax.block_until_ready(out)

    ref = _reference(x, gamma, beta, w1, b1, w2, b2)
    assert out.shape == (B, T, d_model)
    assert jnp.allclose(out, ref, atol=2e-3, rtol=2e-3), float(
        jnp.max(jnp.abs(out - ref)))

    print("KERNEL_OK")
</pallas_src>

<mosaic_0001>
module attributes {stable_mosaic.version = 11 : i64} {
  func.func @k(%arg0: i32, %arg1: memref<1x128xf32, #tpu.memory_space<vmem>>, %arg2: memref<8x128xf32, #tpu.memory_space<vmem>>, %arg3: memref<8x128xf32, #tpu.memory_space<vmem>>) attributes {dimension_semantics = [#tpu.dimension_semantics<arbitrary>], iteration_bounds = array<i64: 2>, scalar_prefetch = 0 : i64, scratch_operands = 0 : i64, tpu.core_type = #tpu.core_type<tc>, window_params = [{pipeline_mode = #tpu.pipeline_mode<synchronous>, transform_indices = @transform_0, window_bounds = array<i64: 1, 128>}, {transform_indices = @transform_1, window_bounds = array<i64: 8, 128>}, {transform_indices = @transform_2, window_bounds = array<i64: 8, 128>}]} {
    %c0 = arith.constant 0 : index
    %c0_0 = arith.constant 0 : index
    %0 = vector.load %arg2[%c0, %c0_0] : memref<8x128xf32, #tpu.memory_space<vmem>>, vector<8x128xf32>
    %c0_1 = arith.constant 0 : index
    %c0_2 = arith.constant 0 : index
    %1 = vector.load %arg1[%c0_1, %c0_2] : memref<1x128xf32, #tpu.memory_space<vmem>>, vector<1x128xf32>
    %2 = vector.broadcast %1 : vector<1x128xf32> to vector<8x128xf32>
    %3 = arith.addf %0, %2 : vector<8x128xf32>
    %c0_3 = arith.constant 0 : index
    %c0_4 = arith.constant 0 : index
    %4 = vector.load %arg3[%c0_3, %c0_4] : memref<8x128xf32, #tpu.memory_space<vmem>>, vector<8x128xf32>
    tpu.vector_store %arg3[%c0_3, %c0_4], %3 {strides = array<i32>} : memref<8x128xf32, #tpu.memory_space<vmem>>, vector<8x128xf32>,
    return
  }
  func.func @transform_0(%arg0: i32) -> (i32, i32) {
    %c0_i32 = arith.constant 0 : i32
    %c0_i32_0 = arith.constant 0 : i32
    %c0_i32_1 = arith.constant 0 : i32
    return %c0_i32, %c0_i32_0 : i32, i32
  }
  func.func @transform_1(%arg0: i32) -> (i32, i32) {
    %c0_i32 = arith.constant 0 : i32
    %c0_i32_0 = arith.constant 0 : i32
    return %arg0, %c0_i32 : i32, i32
  }
  func.func @transform_2(%arg0: i32) -> (i32, i32) {
    %c0_i32 = arith.constant 0 : i32
    %c0_i32_0 = arith.constant 0 : i32
    return %arg0, %c0_i32 : i32, i32
  }
}

module attributes {stable_mosaic.version = 11 : i64} {
  func.func @_ffn_kernel_resident(%arg0: i32, %arg1: memref<16x128xf32, #tpu.memory_space<vmem>>, %arg2: memref<1x128xf32, #tpu.memory_space<vmem>>, %arg3: memref<1x128xf32, #tpu.memory_space<vmem>>, %arg4: memref<128x128xbf16, #tpu.memory_space<vmem>>, %arg5: memref<1x128xf32, #tpu.memory_space<vmem>>, %arg6: memref<128x128xbf16, #tpu.memory_space<vmem>>, %arg7: memref<1x128xf32, #tpu.memory_space<vmem>>, %arg8: memref<16x128xf32, #tpu.memory_space<vmem>>) attributes {dimension_semantics = [#tpu.dimension_semantics<parallel>], iteration_bounds = array<i64: 1>, scalar_prefetch = 0 : i64, scratch_operands = 0 : i64, tpu.core_type = #tpu.core_type<tc>, window_params = [{transform_indices = @transform_0, window_bounds = array<i64: 16, 128>}, {pipeline_mode = #tpu.pipeline_mode<synchronous>, transform_indices = @transform_1, window_bounds = array<i64: 1, 128>}, {pipeline_mode = #tpu.pipeline_mode<synchronous>, transform_indices = @transform_2, window_bounds = array<i64: 1, 128>}, {pipeline_mode = #tpu.pipeline_mode<synchronous>, transform_indices = @transform_3, window_bounds = array<i64: 128, 128>}, {pipeline_mode = #tpu.pipeline_mode<synchronous>, transform_indices = @transform_4, window_bounds = array<i64: 1, 128>}, {pipeline_mode = #tpu.pipeline_mode<synchronous>, transform_indices = @transform_5, window_bounds = array<i64: 128, 128>}, {pipeline_mode = #tpu.pipeline_mode<synchronous>, transform_indices = @transform_6, window_bounds = array<i64: 1, 128>}, {transform_indices = @transform_7, window_bounds = array<i64: 16, 128>}]} {
    %c0 = arith.constant 0 : index
    %c0_0 = arith.constant 0 : index
    %0 = vector.load %arg1[%c0, %c0_0] : memref<16x128xf32, #tpu.memory_space<vmem>>, vector<16x128xf32>
    %c0_1 = arith.constant 0 : index
    %c0_2 = arith.constant 0 : index
    %1 = vector.load %arg2[%c0_1, %c0_2] : memref<1x128xf32, #tpu.memory_space<vmem>>, vector<1x128xf32>
    %c0_3 = arith.constant 0 : index
    %c0_4 = arith.constant 0 : index
    %2 = vector.load %arg3[%c0_3, %c0_4] : memref<1x128xf32, #tpu.memory_space<vmem>>, vector<1x128xf32>
    %3 = tpu.iota {dimensions = array<i32: 1>} : vector<16x128xi32>
    %c32_i32 = arith.constant 32 : i32
    %4 = vector.broadcast %c32_i32 : i32 to vector<16x128xi32>
    %5 = arith.cmpi slt, %3, %4 : vector<16x128xi32>
    %cst = arith.constant dense<0.000000e+00> : vector<16xf32>
    %6 = vector.multi_reduction <add>, %0, %cst [1] : vector<16x128xf32> to vector<16xf32>
    %7 = vector.shape_cast %6 : vector<16xf32> to vector<16x1xf32>
    %cst_5 = arith.constant 3.125000e-02 : f32
    %8 = vector.broadcast %cst_5 : f32 to vector<16x1xf32>
    %9 = arith.mulf %7, %8 : vector<16x1xf32>
    %10 = vector.broadcast %9 : vector<16x1xf32> to vector<16x128xf32>
    %11 = arith.subf %0, %10 : vector<16x128xf32>
    %cst_6 = arith.constant 0.000000e+00 : f32
    %12 = vector.broadcast %cst_6 : f32 to vector<16x128xf32>
    %13 = arith.select %5, %11, %12 : vector<16x128xi1>, vector<16x128xf32>
    %14 = arith.mulf %13, %13 : vector<16x128xf32>
    %cst_7 = arith.constant dense<0.000000e+00> : vector<16xf32>
    %15 = vector.multi_reduction <add>, %14, %cst_7 [1] : vector<16x128xf32> to vector<16xf32>
    %16 = vector.shape_cast %15 : vector<16xf32> to vector<16x1xf32>
    %cst_8 = arith.constant 3.125000e-02 : f32
    %17 = vector.broadcast %cst_8 : f32 to vector<16x1xf32>
    %18 = arith.mulf %16, %17 : vector<16x1xf32>
    %cst_9 = arith.constant 9.99999974E-6 : f32
    %19 = vector.broadcast %cst_9 : f32 to vector<16x1xf32>
    %20 = arith.addf %18, %19 : vector<16x1xf32>
    %21 = math.rsqrt %20 : vector<16x1xf32>
    %22 = vector.broadcast %21 : vector<16x1xf32> to vector<16x128xf32>
    %23 = arith.mulf %13, %22 : vector<16x128xf32>
    %24 = vector.broadcast %1 : vector<1x128xf32> to vector<16x128xf32>
    %25 = arith.mulf %23, %24 : vector<16x128xf32>
    %26 = vector.broadcast %2 : vector<1x128xf32> to vector<16x128xf32>
    %27 = arith.addf %25, %26 : vector<16x128xf32>
    %28 = arith.truncf %27 : vector<16x128xf32> to vector<16x128xbf16>
    %c0_10 = arith.constant 0 : index
    %c0_11 = arith.constant 0 : index
    %29 = vector.load %arg4[%c0_10, %c0_11] : memref<128x128xbf16, #tpu.memory_space<vmem>>, vector<128x128xbf16>
    %cst_12 = arith.constant dense<0.000000e+00> : vector<16x128xf32>
    %30 = tpu.matmul %28, %29, %cst_12 {dimension_numbers = #tpu.dot_dimension_numbers<[1], [0], [0], [1], [0, 0, 1, 1], [], []>} : vector<16x128xbf16>, vector<128x128xbf16>, vector<16x128xf32> -> vector<16x128xf32>
    %c0_13 = arith.constant 0 : index
    %c0_14 = arith.constant 0 : index
    %31 = vector.load %arg5[%c0_13, %c0_14] : memref<1x128xf32, #tpu.memory_space<vmem>>, vector<1x128xf32>
    %32 = vector.broadcast %31 : vector<1x128xf32> to vector<16x128xf32>
    %33 = arith.addf %30, %32 : vector<16x128xf32>
    %cst_15 = arith.constant 0.000000e+00 : f32
    %34 = vector.broadcast %cst_15 : f32 to vector<16x128xf32>
    %35 = arith.maximumf %33, %34 : vector<16x128xf32>
    %36 = arith.truncf %35 : vector<16x128xf32> to vector<16x128xbf16>
    %c0_16 = arith.constant 0 : index
    %c0_17 = arith.constant 0 : index
    %37 = vector.load %arg6[%c0_16, %c0_17] : memref<128x128xbf16, #tpu.memory_space<vmem>>, vector<128x128xbf16>
    %cst_18 = arith.constant dense<0.000000e+00> : vector<16x128xf32>
    %38 = tpu.matmul %36, %37, %cst_18 {dimension_numbers = #tpu.dot_dimension_numbers<[1], [0], [0], [1], [0, 0, 1, 1], [], []>} : vector<16x128xbf16>, vector<128x128xbf16>, vector<16x128xf32> -> vector<16x128xf32>
    %c0_19 = arith.constant 0 : index
    %c0_20 = arith.constant 0 : index
    %39 = vector.load %arg7[%c0_19, %c0_20] : memref<1x128xf32, #tpu.memory_space<vmem>>, vector<1x128xf32>
    %40 = vector.broadcast %39 : vector<1x128xf32> to vector<16x128xf32>
    %41 = arith.addf %38, %40 : vector<16x128xf32>
    %c0_21 = arith.constant 0 : index
    %c0_22 = arith.constant 0 : index
    %42 = vector.load %arg8[%c0_21, %c0_22] : memref<16x128xf32, #tpu.memory_space<vmem>>, vector<16x128xf32>
    tpu.vector_store %arg8[%c0_21, %c0_22], %41 {strides = array<i32>} : memref<16x128xf32, #tpu.memory_space<vmem>>, vector<16x128xf32>,
    return
  }
  func.func @transform_0(%arg0: i32) -> (i32, i32) {
    %c0_i32 = arith.constant 0 : i32
    %c0_i32_0 = arith.constant 0 : i32
    return %arg0, %c0_i32 : i32, i32
  }
  func.func @transform_1(%arg0: i32) -> (i32, i32) {
    %c0_i32 = arith.constant 0 : i32
    %c0_i32_0 = arith.constant 0 : i32
    %c0_i32_1 = arith.constant 0 : i32
    return %c0_i32, %c0_i32_0 : i32, i32
  }
  func.func @transform_2(%arg0: i32) -> (i32, i32) {
    %c0_i32 = arith.constant 0 : i32
    %c0_i32_0 = arith.constant 0 : i32
    %c0_i32_1 = arith.constant 0 : i32
    return %c0_i32, %c0_i32_0 : i32, i32
  }
  func.func @transform_3(%arg0: i32) -> (i32, i32) {
    %c0_i32 = arith.constant 0 : i32
    %c0_i32_0 = arith.constant 0 : i32
    %c0_i32_1 = arith.constant 0 : i32
    return %c0_i32, %c0_i32_0 : i32, i32
  }
  func.func @transform_4(%arg0: i32) -> (i32, i32) {
    %c0_i32 = arith.constant 0 : i32
    %c0_i32_0 = arith.constant 0 : i32
    %c0_i32_1 = arith.constant 0 : i32
    return %c0_i32, %c0_i32_0 : i32, i32
  }
  func.func @transform_5(%arg0: i32) -> (i32, i32) {
    %c0_i32 = arith.constant 0 : i32
    %c0_i32_0 = arith.constant 0 : i32
    %c0_i32_1 = arith.constant 0 : i32
    return %c0_i32, %c0_i32_0 : i32, i32
  }
  func.func @transform_6(%arg0: i32) -> (i32, i32) {
    %c0_i32 = arith.constant 0 : i32
    %c0_i32_0 = arith.constant 0 : i32
    %c0_i32_1 = arith.constant 0 : i32
    return %c0_i32, %c0_i32_0 : i32, i32
  }
  func.func @transform_7(%arg0: i32) -> (i32, i32) {
    %c0_i32 = arith.constant 0 : i32
    %c0_i32_0 = arith.constant 0 : i32
    return %arg0, %c0_i32 : i32, i32
  }
}

</mosaic_0001>

<bundles_post_ra>
// kernel: tpu_custom_call.1
= control target key start
LH: loop header
LB: loop body
LE: loop exit
PB: predicated region body
PF: predicated region fallthrough
CT: control target
= control target key end

     0   :  { %7 = vsyncpa [#allocation3], 0  ;;  %s699_s0 = inlined_call_operand.hbm [shape: f32[1,128], index: 0, kind: input, shape index: {}]   ;;  %s700_s1 = inlined_call_operand.hbm [shape: f32[16,128], index: 1, kind: input, shape index: {}]   ;;  %s701_s2 = inlined_call_operand.hbm [shape: f32[16,128], index: 2, kind: output, shape index: {}]  }
   0x1   :  { %8 = vsyncpa [#allocation6], 0 }
   0x2   :  { %10 = vsyncpa [#allocation6 + $0x1], 0 }
   0x3   :  { %11 = vsyncpa [#allocation4], 0 }
   0x4   :  { %13 = vsyncpa [#allocation4 + $0x1], 0  ;;  %s498_s9 = smov 0   ;;  %s500_s10 = smov 0  }
   0x5   :  { %s502_s11 = smov 0   ;;  %s504_s12 = smov 0  }
   0x6 LB: > { %s519_s13 = sadd.s32 4294967295, %s478_s12   ;;  %s278_s14 = sadd.s32 4294967294, %s478_s12   ;;  %s478_s12 = sphi %s504_s12, %s725_s12   ;;  %s474_s11 = sphi %s502_s11, %s724_s11   ;;  %s470_s10 = sphi %s500_s10, %s723_s10   ;;  %s466_s9 = sphi %s498_s9, %s722_s9  }
   0x7   : > { %p60_p0 = scmp.ne.s32.totalorder %s470_s10, %s466_s9  ;;  %p702_p1 = scmp.eq.s32.totalorder %s519_s13, 0 }
   0x8   : > { %p90_p3 = scmp.eq.s32.totalorder %s278_s14, 1  ;;  %p279_p5 = scmp.ge.s32.totalorder %s478_s12, 1 }
   0x9   : > { %p528_p4 = por %p702_p1, %p60_p0  ;;  %p97_p7 = scmp.lt.s32.totalorder %s478_s12, 3 }
   0xa   : > { %p533_p6 = por %p90_p3, %p60_p0  ;;  %s480_s18 = smov [#allocation2]  }
   0xb   : > { %s705_s15 = scalar_select %p528_p4, 1, 0 }
   0xc   : > { %s706_s16 = scalar_select %p533_p6, 1, 0 }
   0xd   : > { %p538_p8 = pnand %p279_p5, %p97_p7  ;;  %s110_s19 = sshll.u32 %s480_s18, 4  ;;  %s111_s19 = int_to_ptr.vmem [resolvable:$true] %s110_s19 }
   0xe   : > { %s546_s20 = sadd.s32 1, %s478_s12   ;;  %s47_s24 = sadd.s32 1, %s474_s11 }
   0xf   : > { %s707_s17 = scalar_select %p538_p8, 1, 0 }
  0x10   : > { %p301_p10 = pneg %p538_p8  ;;  %s44_s22 = ssub.s32 %s478_s12, %s546_s20 }
  0x11   : > { %p556_p12 = scmp.eq.s32.totalorder %s44_s22, 0  ;;  %s350_s27 = scalar_lea.hbm %s699_s0, 16 }
  0x12   : > { %p550_p11 = pnand %p301_p10, %p702_p1  ;;  %p351_p0 = scmp.ne.s32.totalorder %s699_s0, %s350_s27 }
  0x13   : > { %s709_s23 = scalar_select %p556_p12, 1, 0 }
  0x14   : > { %p352_p3 = pneg %p550_p11  ;;  %p357_p10 = scmp.lt.u32.totalorder %s350_s27, %s699_s0 }
  0x16   : > { %p353_p5 = pnand %p352_p3, %p351_p0 }
  0x18   : > { %p354_p7 = pneg %p353_p5 }
  0x1a   : > { %p359_p9 = pnand %p357_p10, %p354_p7 }
  0x1c   : > { %362 = shalt.err (!%p359_p9)
}
  0x1d   : > { %s363_s4 = scalar_lea.vmem %s111_s19, 16  ;;  %s370_s5 = scalar_lea.vmem %s111_s19, 32 }
  0x1e   : > { %p364_p1 = scmp.ne.s32.totalorder %s111_s19, %s363_s4  ;;  %p371_p6 = scmp.lt.s32.totalorder %s111_s19, %s111_s19 }
  0x1f   : > { %p372_p4 = scmp.lt.s32.totalorder %s370_s5, %s363_s4 }
  0x20   : > { %p366_p2 = pnand %p364_p1, %p352_p3 }
  0x21   : > { %p373_p8 = por %p372_p4, %p371_p6 }
  0x22   : > { %p367_p13 = pneg %p366_p2 }
  0x24   : > { %p374_p12 = pnand %p373_p8, %p367_p13 }
  0x26   : > { %377 = shalt.err (!%p374_p12)
}
  0x27   : > { %304 = dma.hbm_to_vmem [thread:$0]  (!%p550_p11), %s699_s0, 16, %s111_s19, [#allocation3]  }
  0x28   : > { %p710_p1 = scmp.ne.s32.totalorder %s709_s23, 0  ;;  %p55_p2 = scmp.eq.s32.totalorder %s478_s12, 0 }
  0x29   : > { %p711_p4 = scmp.ne.s32.totalorder %s474_s11, %s470_s10  ;;  %p712_p6 = scmp.eq.s32.totalorder %s519_s13, 1 }
  0x2a   : > { %s582_s8 = scalar_select %p710_p1, %s474_s11, %s47_s24  }
  0x2b   : > { %p590_p8 = por %p712_p6, %p711_p4  ;;  %p314_p9 = scmp.lt.s32.totalorder %s478_s12, 2 }
  0x2c   : > { %s121_s18 = sand.u32 1, %s474_s11   ;;  %p714_p12 = pmov %p711_p4 }
  0x2d   : > { %s282_s21 = sshll.u32 %s121_s18, 3  ;;  %s283_s22 = sshll.u32 %s478_s12, 7 }
  0x2e   : > { %p56_p13 = por %p55_p2, %p714_p12  ;;  %s603_s19 = scalar_lea.hbm %s700_s1, %s283_s22 }
  0x2f   : > { %s125_s23 = scalar_lea.vmem [#allocation5], %s282_s21  ;;  %s122_s28 = scalar_lea.sflag [#allocation6], %s121_s18 }
  0x30   : > { %s132_s24 = sshll.u32 %s125_s23, 4  ;;  %p605_p11 = pnand %p314_p9, %p56_p13  ;;  %s609_s24 = int_to_ptr.vmem [resolvable:$true] %s132_s24 }
  0x31   : > { %s378_s29 = scalar_lea.hbm %s603_s19, 128  ;;  %s383_s4 = scalar_lea.hbm %s700_s1, 256 }
  0x32   : > { %p379_p0 = scmp.ne.s32.totalorder %s603_s19, %s378_s29  ;;  %p380_p3 = pneg %p605_p11 }
  0x33   : > { %p384_p10 = scmp.lt.u32.totalorder %s603_s19, %s700_s1  ;;  %p385_p1 = scmp.lt.u32.totalorder %s383_s4, %s378_s29 }
  0x34   : > { %p381_p5 = pnand %p380_p3, %p379_p0  ;;  %p387_p4 = scmp.lt.u32.totalorder %s378_s29, %s603_s19 }
  0x35   : > { %p386_p2 = por %p385_p1, %p384_p10 }
  0x36   : > { %p382_p7 = pneg %p381_p5 }
  0x37   : > { %p388_p6 = por %p387_p4, %p386_p2 }
  0x39   : > { %p389_p9 = pnand %p388_p6, %p382_p7 }
  0x3b   : > { %392 = shalt.err (!%p389_p9)
}
  0x3c   : > { %s393_s7 = scalar_lea.vmem %s609_s24, 128  ;;  %s481_s18 = smov [#allocation5]  }
  0x3d   : > { %p394_p12 = scmp.ne.s32.totalorder %s609_s24, %s393_s7  ;;  %s398_s21 = sshll.u32 %s481_s18, 4  ;;  %s399_s21 = int_to_ptr.vmem [resolvable:$false] %s398_s21 }
  0x3e   : > { %s400_s22 = scalar_lea.vmem %s399_s21, 256  ;;  %p401_p5 = scmp.lt.s32.totalorder %s609_s24, %s399_s21 }
  0x3f   : > { %p396_p13 = pnand %p394_p12, %p380_p3  ;;  %p402_p10 = scmp.lt.s32.totalorder %s400_s22, %s393_s7 }
  0x41   : > { %p397_p0 = pneg %p396_p13  ;;  %p403_p1 = por %p402_p10, %p401_p5 }
  0x43   : > { %p404_p2 = pnand %p403_p1, %p397_p0 }
  0x45   : > { %407 = shalt.err (!%p404_p2)
}
  0x46   : > { %308 = dma.hbm_to_vmem [thread:$0]  (!%p605_p11), %s603_s19, 128, %s609_s24, %s122_s28  }
  0x47   : > { %p716_p7 = scmp.ne.s32.totalorder %s707_s17, 0 }
  0x48   : > { %p717_p3 = scmp.eq.s32.totalorder (!%p716_p7), %s519_s13, 0 }
  0x49   : > { %141 = sbr.rel (%p716_p7) target bundleno = 110 (0x6e), region = 28 }
  0x50   : > { %453 = dma.done.wait (%p717_p3), [#allocation3], 16   ;;  %p718_p4 = pmov %p717_p3 }
  0x51   : > { %s643_s25 = sand.u32 1, %s470_s10   ;;  %p719_p6 = scmp.ne.s32.totalorder %s705_s15, 0 }
  0x52   : > { %455 = vsyncadd (%p718_p4), [#allocation3], 4294967280  ;;  %s286_s26 = sshll.u32 %s643_s25, 3  ;;  %s148_s23 = scalar_lea.sflag [#allocation6], %s643_s25 }
  0x53   : > { %s151_s27 = scalar_lea.vmem [#allocation5], %s286_s26 }
  0x54   : > { %457 = dma.done.wait (%p719_p6), %s148_s23, 128  }
  0x55   : > { %459 = vsyncadd (%p719_p6), %s148_s23, 4294967168  ;;  %s171_s17 = scalar_lea.vmem [#allocation7], %s286_s26  ;;  %s290_s24 = sshll.u32 %s519_s13, 7  ;;  %v172_v0 = vld [vmem:[%s151_s27] sm:$0xff]  ;;  %v288_v1 = vld [vmem:[#allocation2] ss:$0 sm:$0xff] }
  0x56   : > { %s196_s19 = sshll.u32 %s171_s17, 4  ;;  %v180_v2 = vadd.f32 %v288_v1, %v172_v0  ;;  %s657_s30 = scalar_lea.hbm %s701_s2, %s290_s24  ;;  %s652_s19 = int_to_ptr.vmem [resolvable:$true] %s196_s19 }
  0x57   : > { %s183_s15 = scalar_lea.sflag [#allocation4], %s643_s25  ;;  %s408_s3 = scalar_lea.vmem %s652_s19, 128 }
  0x58   : > { %181 = vst [vmem:[%s171_s17] sm:$0xff] %v180_v2  ;;  %p409_p11 = scmp.ne.s32.totalorder %s652_s19, %s408_s3  ;;  %s482_s13 = smov [#allocation7]  }
  0x59   : > { %s412_s4 = sshll.u32 %s482_s13, 4  ;;  %s413_s4 = int_to_ptr.vmem [resolvable:$false] %s412_s4 }
  0x5a   : > { %p410_p9 = pnand %p409_p11, %p590_p8  ;;  %s414_s5 = scalar_lea.vmem %s413_s4, 256 }
  0x5b   : > { %p415_p13 = scmp.lt.s32.totalorder %s652_s19, %s413_s4  ;;  %p416_p0 = scmp.lt.s32.totalorder %s414_s5, %s408_s3 }
  0x5c   : > { %p411_p12 = pneg %p410_p9 }
  0x5d   : > { %p417_p5 = por %p416_p0, %p415_p13 }
  0x5f   : > { %p418_p10 = pnand %p417_p5, %p411_p12 }
  0x61   : > { %421 = shalt.err (!%p418_p10)
}
  0x62   : > { %s422_s6 = scalar_lea.hbm %s657_s30, 128  ;;  %s426_s21 = scalar_lea.hbm %s701_s2, 256 }
  0x63   : > { %p423_p1 = scmp.ne.s32.totalorder %s657_s30, %s422_s6  ;;  %p427_p3 = scmp.lt.u32.totalorder %s657_s30, %s701_s2 }
  0x64   : > { %p428_p4 = scmp.lt.u32.totalorder %s426_s21, %s422_s6  ;;  %p430_p11 = scmp.lt.u32.totalorder %s422_s6, %s657_s30 }
  0x65   : > { %p424_p2 = pnand %p423_p1, %p590_p8 }
  0x66   : > { %p429_p6 = por %p428_p4, %p427_p3 }
  0x67   : > { %p425_p7 = pneg %p424_p2 }
  0x68   : > { %p431_p9 = por %p430_p11, %p429_p6 }
  0x6a   : > { %p432_p12 = pnand %p431_p9, %p425_p7 }
  0x6c   : > { %435 = shalt.err (!%p432_p12)
}
  0x6d   : > { %299 = dma.vmem_to_hbm [thread:$0]  (%p590_p8), %s652_s19, 128, %s657_s30, %s183_s15  }
  0x6e PF: > { %s208_s26 = sand.u32 1, %s466_s9   ;;  %p720_p13 = scmp.ne.s32.totalorder %s706_s16, 0 }
  0x6f   : > { %p721_p0 = scmp.ge.s32.totalorder %s478_s12, 2  ;;  %s209_s23 = scalar_lea.sflag [#allocation4], %s208_s26 }
  0x71   : > { %p310_p5 = pnand %p721_p0, %p720_p13 }
  0x73   : > { %461 = dma.done.wait (!%p310_p5), %s209_s23, 128  }
  0x74   : > { %463 = vsyncadd (!%p310_p5), %s209_s23, 4294967168  ;;  %p16_p10 = scmp.ge.s32.totalorder %s546_s20, 4   ;;  %s722_s9 = smov %s470_s10 }
  0x75   : > { %s723_s10 = smov %s474_s11  ;;  %s724_s11 = smov %s582_s8 }
  0x76   : > { %s725_s12 = smov %s546_s20  ;;  %18 = sbr.rel (!%p16_p10) target bundleno = 6 (0x6), region = 78 }
  0x7d   :  { %214 = vsyncpa [#allocation3], 1 }
  0x7e   :  { %216 = vsyncpa [#allocation3 + $0x1], 1 }
  0x7f   :  { %217 = vsyncpa [#allocation6], 1 }
  0x80   :  { %219 = vsyncpa [#allocation6 + $0x1], 1 }
  0x81   :  { %220 = vsyncpa [#allocation4], 1 }
  0x82   :  { %222 = vsyncpa [#allocation4 + $0x1], 1 }

// kernel: tpu_custom_call.1
= control target key start
LH: loop header
LB: loop body
LE: loop exit
PB: predicated region body
PF: predicated region fallthrough
CT: control target
= control target key end

     0   :  { %12 = vsyncpa [#allocation3], 0  ;;  %s706_s0 = inlined_call_operand.hbm [shape: f32[16,128], index: 0, kind: input, shape index: {}]   ;;  %s707_s1 = inlined_call_operand.vmem [shape: f32[1,128], index: 1, kind: input, shape index: {}]   ;;  %s708_s2 = inlined_call_operand.vmem [shape: f32[1,128], index: 2, kind: input, shape index: {}]   ;;  %s709_s3 = inlined_call_operand.hbm [shape: bf16[128,128], index: 3, kind: input, shape index: {}]   ;;  %s710_s4 = inlined_call_operand.vmem [shape: f32[1,128], index: 4, kind: input, shape index: {}]   ;;  %s711_s5 = inlined_call_operand.hbm [shape: bf16[128,128], index: 5, kind: input, shape index: {}]   ;;  %s712_s6 = inlined_call_operand.vmem [shape: f32[1,128], index: 6, kind: input, shape index: {}]   ;;  %s713_s7 = inlined_call_operand.hbm [shape: f32[16,128], index: 7, kind: output, shape index: {}]  }
   0x1   :  { %13 = vsyncpa [#allocation6], 0 }
   0x2   :  { %14 = vsyncpa [#allocation4], 0  ;;  %s566_s24 = smov [#allocation5]   ;;  %s472_s28 = scalar_lea.hbm %s709_s3, 1024 }
   0x3   :  { %s36_s25 = sshll.u32 %s566_s24, 4  ;;  %p473_p0 = scmp.ne.s32.totalorder %s709_s3, %s472_s28  ;;  %s37_s25 = int_to_ptr.vmem [resolvable:$true] %s36_s25 }
   0x4   :  { %p476_p1 = scmp.lt.u32.totalorder %s472_s28, %s709_s3 }
   0x6   :  { %p478_p2 = pnand %p476_p1, %p473_p0 }
   0x8   :  { %481 = shalt.err (!%p478_p2)
}
   0x9   :  { %s482_s10 = scalar_lea.vmem %s37_s25, 1024  ;;  %p487_p4 = scmp.lt.s32.totalorder %s37_s25, %s37_s25 }
   0xa   :  { %p483_p3 = scmp.ne.s32.totalorder %s37_s25, %s482_s10  ;;  %p488_p5 = scmp.lt.s32.totalorder %s482_s10, %s482_s10 }
   0xc   :  { %p489_p6 = por %p488_p5, %p487_p4 }
   0xe   :  { %p490_p7 = pnand %p489_p6, %p483_p3 }
  0x10   :  { %493 = shalt.err (!%p490_p7)
}
  0x11   :  { %s567_s11 = smov 64   ;;  %s568_s12 = smov 4  }
  0x12   :  { %42 = dma.hbm_to_vmem [thread:$0]  %s709_s3, 1024, %s37_s25, [#allocation6], %s567_s11, %s567_s11, %s568_s12  }
  0x13   :  { %s569_s15 = smov [#allocation2]   ;;  %s494_s19 = scalar_lea.hbm %s706_s0, 256 }
  0x14   :  { %s20_s16 = sshll.u32 %s569_s15, 4  ;;  %p495_p8 = scmp.ne.s32.totalorder %s706_s0, %s494_s19  ;;  %s21_s16 = int_to_ptr.vmem [resolvable:$true] %s20_s16 }
  0x15   :  { %p498_p9 = scmp.lt.u32.totalorder %s494_s19, %s706_s0 }
  0x17   :  { %p500_p10 = pnand %p498_p9, %p495_p8 }
  0x19   :  { %503 = shalt.err (!%p500_p10)
}
  0x1a   :  { %s504_s24 = scalar_lea.vmem %s21_s16, 256  ;;  %p509_p12 = scmp.lt.s32.totalorder %s21_s16, %s21_s16 }
  0x1b   :  { %p505_p11 = scmp.ne.s32.totalorder %s21_s16, %s504_s24  ;;  %p510_p13 = scmp.lt.s32.totalorder %s504_s24, %s504_s24 }
  0x1d   :  { %p511_p0 = por %p510_p13, %p509_p12 }
  0x1f   :  { %p512_p1 = pnand %p511_p0, %p505_p11 }
  0x21   :  { %515 = shalt.err (!%p512_p1)
}
  0x22   :  { %s570_s3 = smov 128   ;;  %s571_s25 = smov 8  }
  0x23   :  { %26 = dma.hbm_to_vmem [thread:$0]  %s706_s0, 256, %s21_s16, [#allocation3], %s570_s3, %s570_s3, %s571_s25  }
  0x24   :  { %s572_s28 = smov [#allocation7]   ;;  %s516_s9 = scalar_lea.hbm %s711_s5, 1024 }
  0x25   :  { %s50_s29 = sshll.u32 %s572_s28, 4  ;;  %p517_p2 = scmp.ne.s32.totalorder %s711_s5, %s516_s9  ;;  %s51_s29 = int_to_ptr.vmem [resolvable:$true] %s50_s29 }
  0x26   :  { %p520_p3 = scmp.lt.u32.totalorder %s516_s9, %s711_s5 }
  0x28   :  { %p522_p4 = pnand %p520_p3, %p517_p2 }
  0x2a   :  { %525 = shalt.err (!%p522_p4)
}
  0x2b   :  { %s526_s17 = scalar_lea.vmem %s51_s29, 1024  ;;  %p531_p6 = scmp.lt.s32.totalorder %s51_s29, %s51_s29 }
  0x2c   :  { %p527_p5 = scmp.ne.s32.totalorder %s51_s29, %s526_s17  ;;  %p532_p7 = scmp.lt.s32.totalorder %s526_s17, %s526_s17 }
  0x2e   :  { %p533_p8 = por %p532_p7, %p531_p6 }
  0x30   :  { %p534_p9 = pnand %p533_p8, %p527_p5 }
  0x32   :  { %537 = shalt.err (!%p534_p9)
}
  0x33   :  { %56 = dma.hbm_to_vmem [thread:$0]  %s711_s5, 1024, %s51_s29, [#allocation6], %s567_s11, %s567_s11, %s568_s12  }
  0x34   :  { %560 = dma.done.wait [#allocation3], 256  }
  0x35   :  { %561 = vsyncadd [#allocation3], 4294967040 }
  0x36   :  { %562 = dma.done.wait [#allocation6], 2048  }
  0x37   :  { %563 = vsyncadd [#allocation6], 4294965248  ;;  %v69_v0 = vld [vmem:[#allocation2] sm:$0xff]  ;;  %v70_v1 = vld [vmem:[#allocation2 + $0x8] sm:$0xff]  ;;  %v573_v3 = vmov 0.0   ;;  %v73_v4 = vlaneseq  ;;  %vm574_vm1 = vmmov 0  }
  0x38   :  { %76 = vadd.xlane.f32.xlu0 %v69_v0  ;;  %v452_v2 = vld [vmem:[#allocation5] sm:$0xff]   ;;  %402 = vmatprep.subr.bf16.mxu0 %v573_v3  ;;  %v453_v16 = vld [vmem:[#allocation5 + $0x8] sm:$0xff]   ;;  %v454_v17 = vld [vmem:[#allocation5 + $0x10] sm:$0xff]   ;;  %s575_s21 = smov [#allocation8]  }
  0x39   :  { %422 = vmatprep.subr.bf16.mxu1 %v573_v3  ;;  %403 = vmatpush3.bf16.msra.mxu0 %v452_v2  ;;  %v74_v5 = vand.u32 127, %v73_v4  ;;  %v455_v18 = vld [vmem:[#allocation5 + $0x18] sm:$0xff]   ;;  %v456_v19 = vld [vmem:[#allocation5 + $0x20] sm:$0xff]   ;;  %v457_v20 = vld [vmem:[#allocation5 + $0x28] sm:$0xff]   ;;  %s351_s22 = sshll.u32 %s575_s21, 4  ;;  %s352_s22 = int_to_ptr.vmem [resolvable:$true] %s351_s22 }
  0x3a   :  { %404 = vmatprep.subr.bf16.mxu0 %v573_v3  ;;  %418 = vmatprep.mubr.msk.bf16.mxu0 %vm574_vm1, %v573_v3  ;;  %v458_v21 = vld [vmem:[#allocation5 + $0x30] sm:$0xff]   ;;  %v459_v22 = vld [vmem:[#allocation5 + $0x38] sm:$0xff]   ;;  %v460_v23 = vld [vmem:[#allocation7] sm:$0xff]   ;;  %p543_p11 = scmp.lt.s32.totalorder %s352_s22, %s352_s22 }
  0x3b   :  { %vm75_vm0 = vcmp.lt.s32.totalorder %v74_v5, 32  ;;  %438 = vmatprep.mubr.msk.bf16.mxu1 %vm574_vm1, %v573_v3  ;;  %423 = vmatpush3.bf16.msra.mxu1 %v460_v23  ;;  %v461_v24 = vld [vmem:[#allocation7 + $0x8] sm:$0xff]   ;;  %v462_v25 = vld [vmem:[#allocation7 + $0x10] sm:$0xff]   ;;  %v463_v26 = vld [vmem:[#allocation7 + $0x18] sm:$0xff]  }
  0x3c   :  { %78 = vadd.xlane.f32.xlu0 %v70_v1  ;;  %424 = vmatprep.subr.bf16.mxu1 %v573_v3  ;;  %v464_v27 = vld [vmem:[#allocation7 + $0x20] sm:$0xff]   ;;  %v465_v28 = vld [vmem:[#allocation7 + $0x28] sm:$0xff]   ;;  %v364_v37 = vld [vmem:[%s707_s1] ss:$0 sm:$0xff] }
  0x3d   :  { %405 = vmatpush3.bf16.msra.mxu0 %v453_v16  ;;  %v365_v41 = vld [vmem:[%s708_s2] ss:$0 sm:$0xff]  ;;  %v467_v47 = vld [vmem:[#allocation7 + $0x38] sm:$0xff]  }
  0x3e   :  { %406 = vmatprep.subr.bf16.mxu0 %v573_v3  ;;  %v466_v46 = vld [vmem:[#allocation7 + $0x30] sm:$0xff]  }
  0x3f   :  { %425 = vmatpush3.bf16.msra.mxu1 %v461_v24  ;;  %v366_v48 = vld [vmem:[%s710_s4] ss:$0 sm:$0xff]  ;;  %s538_s4 = scalar_lea.vmem %s352_s22, 256 }
  0x40   :  { %426 = vmatprep.subr.bf16.mxu1 %v573_v3  ;;  %v375_v58 = vld [vmem:[%s712_s6] ss:$0 sm:$0xff]  ;;  %p539_p10 = scmp.ne.s32.totalorder %s352_s22, %s538_s4  ;;  %p544_p12 = scmp.lt.s32.totalorder %s538_s4, %s538_s4 }
  0x41   :  { %407 = vmatpush3.bf16.msra.mxu0 %v454_v17 }
  0x42   :  { %408 = vmatprep.subr.bf16.mxu0 %v573_v3  ;;  %p545_p13 = por %p544_p12, %p543_p11 }
  0x43   :  { %427 = vmatpush3.bf16.msra.mxu1 %v462_v25 }
  0x44   :  { %428 = vmatprep.subr.bf16.mxu1 %v573_v3  ;;  %p546_p0 = pnand %p545_p13, %p539_p10 }
  0x45   :  { %409 = vmatpush3.bf16.msra.mxu0 %v455_v18 }
  0x46   :  { %410 = vmatprep.subr.bf16.mxu0 %v573_v3 }
  0x47   :  { %429 = vmatpush3.bf16.msra.mxu1 %v463_v26 }
  0x48   :  { %430 = vmatprep.subr.bf16.mxu1 %v573_v3 }
  0x49   :  { %411 = vmatpush3.bf16.msra.mxu0 %v456_v19 }
  0x4a   :  { %412 = vmatprep.subr.bf16.mxu0 %v573_v3 }
  0x4b   :  { %431 = vmatpush3.bf16.msra.mxu1 %v464_v27 }
  0x4c   :  { %432 = vmatprep.subr.bf16.mxu1 %v573_v3 }
  0x4d   :  { %413 = vmatpush3.bf16.msra.mxu0 %v457_v20 }
  0x4e   :  { %414 = vmatprep.subr.bf16.mxu0 %v573_v3 }
  0x4f   :  { %433 = vmatpush3.bf16.msra.mxu1 %v465_v28 }
  0x50   :  { %434 = vmatprep.subr.bf16.mxu1 %v573_v3 }
  0x51   :  { %415 = vmatpush3.bf16.msra.mxu0 %v458_v21 }
  0x52   :  { %416 = vmatprep.subr.bf16.mxu0 %v573_v3 }
  0x53   :  { %435 = vmatpush3.bf16.msra.mxu1 %v466_v46 }
  0x54   :  { %436 = vmatprep.subr.bf16.mxu1 %v573_v3 }
  0x55   :  { %417 = vmatpush3.bf16.msra.mxu0 %v459_v22 }
  0x57   :  { %437 = vmatpush3.bf16.msra.mxu1 %v467_v47 }
  0xc5   :  { %v77_v6 = vpop.xlane.xlu0 %76 }
  0xc6   :  { %v80_v7 = vmul.f32 0.03125, %v77_v6 }
  0xc8   :  { %v82_v8 = vsub.f32 %v69_v0, %v80_v7 }
  0xc9   :  { %v79_v9 = vpop.xlane.xlu0 %78 }
  0xca   :  { %v81_v10 = vmul.f32 0.03125, %v79_v9  ;;  %v84_v11 = vsel %vm75_vm0, %v82_v8, 0.0 }
  0xcb   :  { %v86_v12 = vmul.f32 %v84_v11, %v84_v11 }
  0xcc   :  { %v83_v13 = vsub.f32 %v70_v1, %v81_v10 }
  0xcd   :  { %88 = vadd.xlane.f32.xlu1 %v86_v12 }
  0xce   :  { %v85_v14 = vsel %vm75_vm0, %v83_v13, 0.0 }
  0xcf   :  { %v87_v15 = vmul.f32 %v85_v14, %v85_v14 }
  0xd1   :  { %90 = vadd.xlane.f32.xlu1 %v87_v15 }
 0x15a   :  { %v89_v29 = vpop.xlane.xlu1 %88 }
 0x15b   :  { %v92_v30 = vmul.f32 0.03125, %v89_v29 }
 0x15d   :  { %v94_v31 = vadd.f32 1e-05, %v92_v30 }
 0x15e   :  { %v91_v32 = vpop.xlane.xlu1 %90 }
 0x15f   :  { %468 = vrsqrt.f32 %v94_v31  ;;  %v93_v33 = vmul.f32 0.03125, %v91_v32 }
 0x161   :  { %v95_v34 = vadd.f32 1e-05, %v93_v33 }
 0x163   :  { %470 = vrsqrt.f32 %v95_v34 }
 0x169   :  { %v469_v35 = vpop.eup %468 }
 0x16a   :  { %v98_v36 = vmul.f32 %v469_v35, %v84_v11 }
 0x16c   :  { %v106_v40 = vmul.f32 %v364_v37, %v98_v36 }
 0x16d   :  { %v471_v38 = vpop.eup %470 }
 0x16e   :  { %v99_v39 = vmul.f32 %v471_v38, %v85_v14  ;;  %v114_v43 = vadd.f32 %v365_v41, %v106_v40 }
 0x170   :  { %v107_v42 = vmul.f32 %v364_v37, %v99_v39 }
 0x172   :  { %v115_v44 = vadd.f32 %v365_v41, %v107_v42 }
 0x174   :  { %v116_v45 = vpack.c.bf16 %v115_v44, %v114_v43 }
 0x176   :  { %419 = vmatmul.mubr.bf16.vlgmr.msra.gmra.mrb[0].mxu0 %v116_v45 }
 0x249   :  { %v222_v49 = vpop.f32.mrb[0].mxu0 }
 0x24a   :  { %v223_v50 = vadd.f32 %v366_v48, %v222_v49  ;;  %v420_v51 = vpop.f32.mrb[1].mxu0 }
 0x24b   :  { %v225_v52 = vpop.f32.mrb[2].mxu0 }
 0x24c   :  { %v226_v53 = vadd.f32 %v366_v48, %v225_v52  ;;  %v421_v54 = vpop.f32.mrb[3].mxu0  ;;  %v229_v55 = vmax.f32 %v223_v50, 0.0 }
 0x24e   :  { %v230_v56 = vmax.f32 %v226_v53, 0.0 }
 0x250   :  { %v231_v57 = vpack.c.bf16 %v230_v56, %v229_v55 }
 0x252   :  { %439 = vmatmul.mubr.bf16.vlgmr.msra.gmra.mrb[0].mxu1 %v231_v57 }
 0x325   :  { %v337_v59 = vpop.f32.mrb[0].mxu1 }
 0x326   :  { %v338_v60 = vadd.f32 %v375_v58, %v337_v59  ;;  %v440_v61 = vpop.f32.mrb[1].mxu1 }
 0x327   :  { %v340_v62 = vpop.f32.mrb[2].mxu1 }
 0x328   :  { %344 = vst [vmem:[#allocation8] sm:$0xff] %v338_v60  ;;  %v341_v63 = vadd.f32 %v375_v58, %v340_v62  ;;  %v441_v0 = vpop.f32.mrb[3].mxu1 }
 0x32a   :  { %345 = vst [vmem:[#allocation8 + $0x8] sm:$0xff] %v341_v63 }
 0x32b   :  { %549 = shalt.err (!%p546_p0)
}
 0x32c   :  { %s550_s24 = scalar_lea.hbm %s713_s7, 256 }
 0x32d   :  { %p551_p1 = scmp.ne.s32.totalorder %s713_s7, %s550_s24  ;;  %p554_p2 = scmp.lt.u32.totalorder %s550_s24, %s713_s7 }
 0x32f   :  { %p556_p3 = pnand %p554_p2, %p551_p1 }
 0x331   :  { %559 = shalt.err (!%p556_p3)
}
 0x332   :  { %357 = dma.vmem_to_hbm [thread:$0]  %s352_s22, 256, %s713_s7, [#allocation4], %s570_s3, %s570_s3, %s571_s25  }
 0x333   :  { %564 = dma.done.wait [#allocation4], 256  }
 0x334   :  { %565 = vsyncadd [#allocation4], 4294967040 }
 0x335   :  { %361 = vsyncpa [#allocation3], 1 }
 0x336   :  { %362 = vsyncpa [#allocation6], 1 }
 0x337   :  { %363 = vsyncpa [#allocation4], 1 }

</bundles_post_ra>
